<compile_context>
chip_gen: v7x
topology: tpu7x:2x2x1
jax: 0.10.0
libtpu: 0.0.40
codegen_flags: <defaults>
</compile_context>

<pallas_src>
import math

import jax
import jax.numpy as jnp
import numpy as np
from jax.experimental import pallas as pl

# Problem sizes (small, consistent with the module's forward).
B = 2            # batch
S = 8            # sequence length
E = 32           # embed_dim
H = 4            # num_heads
DH = E // H      # head_dim
O = 8            # output_size
BS = B * S
OE = O * E


def attention_mapper_kernel(x_ref, w_in_t_ref, b_in_ref, w_comb_ref, b_comb_ref, o_ref):
    """Single grid-less invocation.

    x_ref:      (B*S, E)    flattened input
    w_in_t_ref: (E, 3E)     in_proj_weight, pre-transposed host-side
    b_in_ref:   (1, 3E)     in_proj_bias
    w_comb_ref: (E, O*E)    (linear.weight @ out_proj.weight)^T    (fused projection)
    b_comb_ref: (1, O*E)    out_proj.bias @ linear.weight^T + linear.bias
    o_ref:      (B*S, O*E)  lane-dense output slab
    """
    x = x_ref[...]                                                      # (BS, E)

    # QKV projection: weights already transposed, so a plain x @ W (no in-kernel .T).
    qkv = jnp.dot(x, w_in_t_ref[...],
                  preferred_element_type=jnp.float32) + b_in_ref[...]   # (BS, 3E)
    qkv3 = qkv.reshape(B, S, 3 * E)                                     # leading-dim split only

    scale = jnp.float32(1.0 / math.sqrt(DH))
    acc = jnp.zeros((BS, OE), jnp.float32)

    # Per-head attention, batched over B with 3-D contractions.  Each head's context
    # is immediately multiplied by its DH-row slice of the fused output weight, so no
    # concatenate and no separate out_proj matmul are needed.
    for h in range(H):
        qh = qkv3[:, :, h * DH:(h + 1) * DH]                            # (B, S, DH)
        kh = qkv3[:, :, E + h * DH:E + (h + 1) * DH]                    # (B, S, DH)
        vh = qkv3[:, :, 2 * E + h * DH:2 * E + (h + 1) * DH]            # (B, S, DH)

        s = jnp.einsum('bqd,bkd->bqk', qh, kh,
                       preferred_element_type=jnp.float32) * scale      # (B, S, S)
        s = s - jnp.max(s, axis=-1, keepdims=True)
        p = jnp.exp(s)
        p = p * pl.reciprocal(jnp.sum(p, axis=-1, keepdims=True), approx=True)
        ctx_h = jnp.einsum('bqk,bkd->bqd', p, vh,
                           preferred_element_type=jnp.float32)          # (B, S, DH)

        acc = acc + jnp.dot(ctx_h.reshape(BS, DH),
                            w_comb_ref[h * DH:(h + 1) * DH, :],
                            preferred_element_type=jnp.float32)         # (BS, O*E)

    # Single unmasked, lane-dense store (last dim = 256).
    o_ref[...] = (acc + b_comb_ref[...]).astype(o_ref.dtype)


@jax.jit
def attention_mapper(x, w_in, b_in, w_out, b_out, w_lin, b_lin):
    hp = jax.lax.Precision.HIGHEST
    # One-off weight plumbing outside the kernel:
    #   mapped = (ctx @ W_out^T + b_out) @ W_lin^T + b_lin
    #          =  ctx @ (W_lin @ W_out)^T + (b_out @ W_lin^T + b_lin)
    w_in_t = w_in.T                                                 # (E, 3E)
    w_comb = jnp.dot(w_lin, w_out, precision=hp).T                  # (E, O*E)
    b_comb = jnp.dot(b_out, w_lin.T, precision=hp) + b_lin          # (1, O*E)

    mapped = pl.pallas_call(
        attention_mapper_kernel,
        out_shape=jax.ShapeDtypeStruct((BS, OE), jnp.float32),
    )(x.reshape(BS, E), w_in_t, b_in, w_comb, b_comb)

    # view(B, S, O, E).permute(2, 0, 1, 3) — pure layout, done in the wrapper.
    return mapped.reshape(B, S, O, E).transpose(2, 0, 1, 3)


def reference_forward(x, w_in, b_in, w_out, b_out, w_lin, b_lin):
    """Pure-JAX reference mirroring nn.MultiheadAttention(batch_first=True) + Linear."""
    hp = jax.lax.Precision.HIGHEST
    qkv = jnp.einsum('bse,fe->bsf', x, w_in, precision=hp) + b_in[0]      # (B, S, 3E)
    q, k, v = qkv[..., :E], qkv[..., E:2 * E], qkv[..., 2 * E:]
    qh = q.reshape(B, S, H, DH).transpose(0, 2, 1, 3)
    kh = k.reshape(B, S, H, DH).transpose(0, 2, 1, 3)
    vh = v.reshape(B, S, H, DH).transpose(0, 2, 1, 3)
    scores = jnp.einsum('bhqd,bhkd->bhqk', qh, kh, precision=hp) / math.sqrt(DH)
    p = jax.nn.softmax(scores, axis=-1)
    ctx = jnp.einsum('bhqk,bhkd->bhqd', p, vh, precision=hp)
    ctx = ctx.transpose(0, 2, 1, 3).reshape(B, S, E)
    attn_out = jnp.einsum('bse,fe->bsf', ctx, w_out, precision=hp) + b_out[0]
    mapped = jnp.einsum('bse,fe->bsf', attn_out, w_lin, precision=hp) + b_lin[0]
    mapped = mapped.reshape(B, S, O, E).transpose(2, 0, 1, 3)             # (O, B, S, E)
    return mapped


if __name__ == "__main__":
    key = jax.random.PRNGKey(0)
    kx, k1, k2, k3, k4, k5, k6 = jax.random.split(key, 7)

    # Deterministic synthetic parameters (shapes from AttentionMapper.__init__).
    x = jax.random.normal(kx, (B, S, E), dtype=jnp.float32)
    w_in = 0.05 * jax.random.normal(k1, (3 * E, E), dtype=jnp.float32)    # attn.in_proj_weight
    b_in = 0.05 * jax.random.normal(k2, (1, 3 * E), dtype=jnp.float32)    # attn.in_proj_bias
    w_out = 0.05 * jax.random.normal(k3, (E, E), dtype=jnp.float32)       # attn.out_proj.weight
    b_out = 0.05 * jax.random.normal(k4, (1, E), dtype=jnp.float32)       # attn.out_proj.bias
    w_lin = 0.05 * jax.random.normal(k5, (O * E, E), dtype=jnp.float32)   # linear.weight
    b_lin = 0.05 * jax.random.normal(k6, (1, O * E), dtype=jnp.float32)   # linear.bias

    out = attention_mapper(x, w_in, b_in, w_out, b_out, w_lin, b_lin)
    out = jax.block_until_ready(out)

    ref = reference_forward(x, w_in, b_in, w_out, b_out, w_lin, b_lin)
    assert out.shape == (O, B, S, E), out.shape
    # Slightly relaxed tolerance: approx reciprocal (EUP vrcp) + fused out_proj/linear
    # weights introduce ~1e-5..1e-4-level differences vs. the unfused f32 reference.
    np.testing.assert_allclose(np.asarray(out), np.asarray(ref), atol=2e-4, rtol=2e-4)

    print("KERNEL_OK")
</pallas_src>

<mosaic_0001>
module attributes {stable_mosaic.version = 11 : i64} {
  func.func @attention_mapper_kernel(%arg0: memref<16x32xf32, #tpu.memory_space<vmem>>, %arg1: memref<32x96xf32, #tpu.memory_space<vmem>>, %arg2: memref<1x96xf32, #tpu.memory_space<vmem>>, %arg3: memref<32x256xf32, #tpu.memory_space<vmem>>, %arg4: memref<1x256xf32, #tpu.memory_space<vmem>>, %arg5: memref<16x256xf32, #tpu.memory_space<vmem>>) attributes {dimension_semantics = [], scalar_prefetch = 0 : i64, scratch_operands = 0 : i64, tpu.core_type = #tpu.core_type<tc>} {
    %c0 = arith.constant 0 : index
    %c0_0 = arith.constant 0 : index
    %0 = vector.load %arg0[%c0, %c0_0] : memref<16x32xf32, #tpu.memory_space<vmem>>, vector<16x32xf32>
    %c0_1 = arith.constant 0 : index
    %c0_2 = arith.constant 0 : index
    %1 = vector.load %arg1[%c0_1, %c0_2] : memref<32x96xf32, #tpu.memory_space<vmem>>, vector<32x96xf32>
    %cst = arith.constant dense<0.000000e+00> : vector<16x96xf32>
    %2 = tpu.matmul %0, %1, %cst {dimension_numbers = #tpu.dot_dimension_numbers<[1], [0], [0], [1], [0, 0, 1, 1], [], []>} : vector<16x32xf32>, vector<32x96xf32>, vector<16x96xf32> -> vector<16x96xf32>
    %c0_3 = arith.constant 0 : index
    %c0_4 = arith.constant 0 : index
    %3 = vector.load %arg2[%c0_3, %c0_4] : memref<1x96xf32, #tpu.memory_space<vmem>>, vector<1x96xf32>
    %4 = vector.broadcast %3 : vector<1x96xf32> to vector<16x96xf32>
    %5 = arith.addf %2, %4 : vector<16x96xf32>
    %6 = vector.shape_cast %5 : vector<16x96xf32> to vector<2x8x96xf32>
    %cst_5 = arith.constant 0.000000e+00 : f32
    %7 = vector.broadcast %cst_5 : f32 to vector<16x256xf32>
    %8 = vector.extract_strided_slice %6 {offsets = [0, 0, 0], sizes = [2, 8, 8], strides = [1, 1, 1]} : vector<2x8x96xf32> to vector<2x8x8xf32>
    %9 = vector.extract_strided_slice %6 {offsets = [0, 0, 32], sizes = [2, 8, 8], strides = [1, 1, 1]} : vector<2x8x96xf32> to vector<2x8x8xf32>
    %10 = vector.extract_strided_slice %6 {offsets = [0, 0, 64], sizes = [2, 8, 8], strides = [1, 1, 1]} : vector<2x8x96xf32> to vector<2x8x8xf32>
    "tpu.trace_start"() <{level = 10 : i32, message = "bqd,bkd->bqk"}> : () -> ()
    %cst_6 = arith.constant dense<0.000000e+00> : vector<2x8x8xf32>
    %11 = tpu.matmul %8, %9, %cst_6 {dimension_numbers = #tpu.dot_dimension_numbers<[2], [2], [1], [1], [0, 0, 0, 1, 1, 1], [0], [0]>} : vector<2x8x8xf32>, vector<2x8x8xf32>, vector<2x8x8xf32> -> vector<2x8x8xf32>
    "tpu.trace_stop"() : () -> ()
    %cst_7 = arith.constant 0.353553385 : f32
    %12 = vector.broadcast %cst_7 : f32 to vector<2x8x8xf32>
    %13 = arith.mulf %11, %12 : vector<2x8x8xf32>
    %cst_8 = arith.constant dense<0xFF800000> : vector<2x8xf32>
    %14 = vector.multi_reduction <maximumf>, %13, %cst_8 [2] : vector<2x8x8xf32> to vector<2x8xf32>
    %15 = vector.shape_cast %14 : vector<2x8xf32> to vector<2x8x1xf32>
    %16 = vector.broadcast %15 : vector<2x8x1xf32> to vector<2x8x8xf32>
    %17 = arith.subf %13, %16 : vector<2x8x8xf32>
    %18 = math.exp %17 : vector<2x8x8xf32>
    %cst_9 = arith.constant dense<0.000000e+00> : vector<2x8xf32>
    %19 = vector.multi_reduction <add>, %18, %cst_9 [2] : vector<2x8x8xf32> to vector<2x8xf32>
    %20 = vector.shape_cast %19 : vector<2x8xf32> to vector<2x8x1xf32>
    %21 = tpu.reciprocal %20 {approx = true} : vector<2x8x1xf32> -> vector<2x8x1xf32>
    %22 = vector.broadcast %21 : vector<2x8x1xf32> to vector<2x8x8xf32>
    %23 = arith.mulf %18, %22 : vector<2x8x8xf32>
    "tpu.trace_start"() <{level = 10 : i32, message = "bqk,bkd->bqd"}> : () -> ()
    %cst_10 = arith.constant dense<0.000000e+00> : vector<2x8x8xf32>
    %24 = tpu.matmul %23, %10, %cst_10 {dimension_numbers = #tpu.dot_dimension_numbers<[2], [1], [1], [2], [0, 0, 0, 1, 1, 2], [0], [0]>} : vector<2x8x8xf32>, vector<2x8x8xf32>, vector<2x8x8xf32> -> vector<2x8x8xf32>
    "tpu.trace_stop"() : () -> ()
    %25 = vector.shape_cast %24 : vector<2x8x8xf32> to vector<16x8xf32>
    %c0_11 = arith.constant 0 : index
    %c0_12 = arith.constant 0 : index
    %26 = vector.load %arg3[%c0_11, %c0_12] : memref<32x256xf32, #tpu.memory_space<vmem>>, vector<8x256xf32>
    %cst_13 = arith.constant dense<0.000000e+00> : vector<16x256xf32>
    %27 = tpu.matmul %25, %26, %cst_13 {dimension_numbers = #tpu.dot_dimension_numbers<[1], [0], [0], [1], [0, 0, 1, 1], [], []>} : vector<16x8xf32>, vector<8x256xf32>, vector<16x256xf32> -> vector<16x256xf32>
    %28 = arith.addf %7, %27 : vector<16x256xf32>
    %29 = vector.extract_strided_slice %6 {offsets = [0, 0, 8], sizes = [2, 8, 8], strides = [1, 1, 1]} : vector<2x8x96xf32> to vector<2x8x8xf32>
    %30 = vector.extract_strided_slice %6 {offsets = [0, 0, 40], sizes = [2, 8, 8], strides = [1, 1, 1]} : vector<2x8x96xf32> to vector<2x8x8xf32>
    %31 = vector.extract_strided_slice %6 {offsets = [0, 0, 72], sizes = [2, 8, 8], strides = [1, 1, 1]} : vector<2x8x96xf32> to vector<2x8x8xf32>
    "tpu.trace_start"() <{level = 10 : i32, message = "bqd,bkd->bqk"}> : () -> ()
    %cst_14 = arith.constant dense<0.000000e+00> : vector<2x8x8xf32>
    %32 = tpu.matmul %29, %30, %cst_14 {dimension_numbers = #tpu.dot_dimension_numbers<[2], [2], [1], [1], [0, 0, 0, 1, 1, 1], [0], [0]>} : vector<2x8x8xf32>, vector<2x8x8xf32>, vector<2x8x8xf32> -> vector<2x8x8xf32>
    "tpu.trace_stop"() : () -> ()
    %cst_15 = arith.constant 0.353553385 : f32
    %33 = vector.broadcast %cst_15 : f32 to vector<2x8x8xf32>
    %34 = arith.mulf %32, %33 : vector<2x8x8xf32>
    %cst_16 = arith.constant dense<0xFF800000> : vector<2x8xf32>
    %35 = vector.multi_reduction <maximumf>, %34, %cst_16 [2] : vector<2x8x8xf32> to vector<2x8xf32>
    %36 = vector.shape_cast %35 : vector<2x8xf32> to vector<2x8x1xf32>
    %37 = vector.broadcast %36 : vector<2x8x1xf32> to vector<2x8x8xf32>
    %38 = arith.subf %34, %37 : vector<2x8x8xf32>
    %39 = math.exp %38 : vector<2x8x8xf32>
    %cst_17 = arith.constant dense<0.000000e+00> : vector<2x8xf32>
    %40 = vector.multi_reduction <add>, %39, %cst_17 [2] : vector<2x8x8xf32> to vector<2x8xf32>
    %41 = vector.shape_cast %40 : vector<2x8xf32> to vector<2x8x1xf32>
    %42 = tpu.reciprocal %41 {approx = true} : vector<2x8x1xf32> -> vector<2x8x1xf32>
    %43 = vector.broadcast %42 : vector<2x8x1xf32> to vector<2x8x8xf32>
    %44 = arith.mulf %39, %43 : vector<2x8x8xf32>
    "tpu.trace_start"() <{level = 10 : i32, message = "bqk,bkd->bqd"}> : () -> ()
    %cst_18 = arith.constant dense<0.000000e+00> : vector<2x8x8xf32>
    %45 = tpu.matmul %44, %31, %cst_18 {dimension_numbers = #tpu.dot_dimension_numbers<[2], [1], [1], [2], [0, 0, 0, 1, 1, 2], [0], [0]>} : vector<2x8x8xf32>, vector<2x8x8xf32>, vector<2x8x8xf32> -> vector<2x8x8xf32>
    "tpu.trace_stop"() : () -> ()
    %46 = vector.shape_cast %45 : vector<2x8x8xf32> to vector<16x8xf32>
    %c8 = arith.constant 8 : index
    %c0_19 = arith.constant 0 : index
    %47 = vector.load %arg3[%c8, %c0_19] : memref<32x256xf32, #tpu.memory_space<vmem>>, vector<8x256xf32>
    %cst_20 = arith.constant dense<0.000000e+00> : vector<16x256xf32>
    %48 = tpu.matmul %46, %47, %cst_20 {dimension_numbers = #tpu.dot_dimension_numbers<[1], [0], [0], [1], [0, 0, 1, 1], [], []>} : vector<16x8xf32>, vector<8x256xf32>, vector<16x256xf32> -> vector<16x256xf32>
    %49 = arith.addf %28, %48 : vector<16x256xf32>
    %50 = vector.extract_strided_slice %6 {offsets = [0, 0, 16], sizes = [2, 8, 8], strides = [1, 1, 1]} : vector<2x8x96xf32> to vector<2x8x8xf32>
    %51 = vector.extract_strided_slice %6 {offsets = [0, 0, 48], sizes = [2, 8, 8], strides = [1, 1, 1]} : vector<2x8x96xf32> to vector<2x8x8xf32>
    %52 = vector.extract_strided_slice %6 {offsets = [0, 0, 80], sizes = [2, 8, 8], strides = [1, 1, 1]} : vector<2x8x96xf32> to vector<2x8x8xf32>
    "tpu.trace_start"() <{level = 10 : i32, message = "bqd,bkd->bqk"}> : () -> ()
    %cst_21 = arith.constant dense<0.000000e+00> : vector<2x8x8xf32>
    %53 = tpu.matmul %50, %51, %cst_21 {dimension_numbers = #tpu.dot_dimension_numbers<[2], [2], [1], [1], [0, 0, 0, 1, 1, 1], [0], [0]>} : vector<2x8x8xf32>, vector<2x8x8xf32>, vector<2x8x8xf32> -> vector<2x8x8xf32>
    "tpu.trace_stop"() : () -> ()
    %cst_22 = arith.constant 0.353553385 : f32
    %54 = vector.broadcast %cst_22 : f32 to vector<2x8x8xf32>
    %55 = arith.mulf %53, %54 : vector<2x8x8xf32>
    %cst_23 = arith.constant dense<0xFF800000> : vector<2x8xf32>
    %56 = vector.multi_reduction <maximumf>, %55, %cst_23 [2] : vector<2x8x8xf32> to vector<2x8xf32>
    %57 = vector.shape_cast %56 : vector<2x8xf32> to vector<2x8x1xf32>
    %58 = vector.broadcast %57 : vector<2x8x1xf32> to vector<2x8x8xf32>
    %59 = arith.subf %55, %58 : vector<2x8x8xf32>
    %60 = math.exp %59 : vector<2x8x8xf32>
    %cst_24 = arith.constant dense<0.000000e+00> : vector<2x8xf32>
    %61 = vector.multi_reduction <add>, %60, %cst_24 [2] : vector<2x8x8xf32> to vector<2x8xf32>
    %62 = vector.shape_cast %61 : vector<2x8xf32> to vector<2x8x1xf32>
    %63 = tpu.reciprocal %62 {approx = true} : vector<2x8x1xf32> -> vector<2x8x1xf32>
    %64 = vector.broadcast %63 : vector<2x8x1xf32> to vector<2x8x8xf32>
    %65 = arith.mulf %60, %64 : vector<2x8x8xf32>
    "tpu.trace_start"() <{level = 10 : i32, message = "bqk,bkd->bqd"}> : () -> ()
    %cst_25 = arith.constant dense<0.000000e+00> : vector<2x8x8xf32>
    %66 = tpu.matmul %65, %52, %cst_25 {dimension_numbers = #tpu.dot_dimension_numbers<[2], [1], [1], [2], [0, 0, 0, 1, 1, 2], [0], [0]>} : vector<2x8x8xf32>, vector<2x8x8xf32>, vector<2x8x8xf32> -> vector<2x8x8xf32>
    "tpu.trace_stop"() : () -> ()
    %67 = vector.shape_cast %66 : vector<2x8x8xf32> to vector<16x8xf32>
    %c16 = arith.constant 16 : index
    %c0_26 = arith.constant 0 : index
    %68 = vector.load %arg3[%c16, %c0_26] : memref<32x256xf32, #tpu.memory_space<vmem>>, vector<8x256xf32>
    %cst_27 = arith.constant dense<0.000000e+00> : vector<16x256xf32>
    %69 = tpu.matmul %67, %68, %cst_27 {dimension_numbers = #tpu.dot_dimension_numbers<[1], [0], [0], [1], [0, 0, 1, 1], [], []>} : vector<16x8xf32>, vector<8x256xf32>, vector<16x256xf32> -> vector<16x256xf32>
    %70 = arith.addf %49, %69 : vector<16x256xf32>
    %71 = vector.extract_strided_slice %6 {offsets = [0, 0, 24], sizes = [2, 8, 8], strides = [1, 1, 1]} : vector<2x8x96xf32> to vector<2x8x8xf32>
    %72 = vector.extract_strided_slice %6 {offsets = [0, 0, 56], sizes = [2, 8, 8], strides = [1, 1, 1]} : vector<2x8x96xf32> to vector<2x8x8xf32>
    %73 = vector.extract_strided_slice %6 {offsets = [0, 0, 88], sizes = [2, 8, 8], strides = [1, 1, 1]} : vector<2x8x96xf32> to vector<2x8x8xf32>
    "tpu.trace_start"() <{level = 10 : i32, message = "bqd,bkd->bqk"}> : () -> ()
    %cst_28 = arith.constant dense<0.000000e+00> : vector<2x8x8xf32>
    %74 = tpu.matmul %71, %72, %cst_28 {dimension_numbers = #tpu.dot_dimension_numbers<[2], [2], [1], [1], [0, 0, 0, 1, 1, 1], [0], [0]>} : vector<2x8x8xf32>, vector<2x8x8xf32>, vector<2x8x8xf32> -> vector<2x8x8xf32>
    "tpu.trace_stop"() : () -> ()
    %cst_29 = arith.constant 0.353553385 : f32
    %75 = vector.broadcast %cst_29 : f32 to vector<2x8x8xf32>
    %76 = arith.mulf %74, %75 : vector<2x8x8xf32>
    %cst_30 = arith.constant dense<0xFF800000> : vector<2x8xf32>
    %77 = vector.multi_reduction <maximumf>, %76, %cst_30 [2] : vector<2x8x8xf32> to vector<2x8xf32>
    %78 = vector.shape_cast %77 : vector<2x8xf32> to vector<2x8x1xf32>
    %79 = vector.broadcast %78 : vector<2x8x1xf32> to vector<2x8x8xf32>
    %80 = arith.subf %76, %79 : vector<2x8x8xf32>
    %81 = math.exp %80 : vector<2x8x8xf32>
    %cst_31 = arith.constant dense<0.000000e+00> : vector<2x8xf32>
    %82 = vector.multi_reduction <add>, %81, %cst_31 [2] : vector<2x8x8xf32> to vector<2x8xf32>
    %83 = vector.shape_cast %82 : vector<2x8xf32> to vector<2x8x1xf32>
    %84 = tpu.reciprocal %83 {approx = true} : vector<2x8x1xf32> -> vector<2x8x1xf32>
    %85 = vector.broadcast %84 : vector<2x8x1xf32> to vector<2x8x8xf32>
    %86 = arith.mulf %81, %85 : vector<2x8x8xf32>
    "tpu.trace_start"() <{level = 10 : i32, message = "bqk,bkd->bqd"}> : () -> ()
    %cst_32 = arith.constant dense<0.000000e+00> : vector<2x8x8xf32>
    %87 = tpu.matmul %86, %73, %cst_32 {dimension_numbers = #tpu.dot_dimension_numbers<[2], [1], [1], [2], [0, 0, 0, 1, 1, 2], [0], [0]>} : vector<2x8x8xf32>, vector<2x8x8xf32>, vector<2x8x8xf32> -> vector<2x8x8xf32>
    "tpu.trace_stop"() : () -> ()
    %88 = vector.shape_cast %87 : vector<2x8x8xf32> to vector<16x8xf32>
    %c24 = arith.constant 24 : index
    %c0_33 = arith.constant 0 : index
    %89 = vector.load %arg3[%c24, %c0_33] : memref<32x256xf32, #tpu.memory_space<vmem>>, vector<8x256xf32>
    %cst_34 = arith.constant dense<0.000000e+00> : vector<16x256xf32>
    %90 = tpu.matmul %88, %89, %cst_34 {dimension_numbers = #tpu.dot_dimension_numbers<[1], [0], [0], [1], [0, 0, 1, 1], [], []>} : vector<16x8xf32>, vector<8x256xf32>, vector<16x256xf32> -> vector<16x256xf32>
    %91 = arith.addf %70, %90 : vector<16x256xf32>
    %c0_35 = arith.constant 0 : index
    %c0_36 = arith.constant 0 : index
    %92 = vector.load %arg4[%c0_35, %c0_36] : memref<1x256xf32, #tpu.memory_space<vmem>>, vector<1x256xf32>
    %93 = vector.broadcast %92 : vector<1x256xf32> to vector<16x256xf32>
    %94 = arith.addf %91, %93 : vector<16x256xf32>
    %c0_37 = arith.constant 0 : index
    %c0_38 = arith.constant 0 : index
    %95 = vector.load %arg5[%c0_37, %c0_38] : memref<16x256xf32, #tpu.memory_space<vmem>>, vector<16x256xf32>
    tpu.vector_store %arg5[%c0_37, %c0_38], %94 {strides = array<i32>} : memref<16x256xf32, #tpu.memory_space<vmem>>, vector<16x256xf32>,
    return
  }
}

</mosaic_0001>

<bundles_post_ra>
// kernel: attention_mapper.1
= control target key start
LH: loop header
LB: loop body
LE: loop exit
PB: predicated region body
PF: predicated region fallthrough
CT: control target
= control target key end

     0   :  { %vm33_vm0 = vcmask 261120   ;;  %v2043_v8 = vmov 0.0   ;;  %vm2044_vm1 = vmmov 0   ;;  %vm118_vm2 = vcmask 64512   ;;  %s2047_s6 = smov 88   ;;  %s2048_s7 = smov 120   ;;  %s2295_s1 = inlined_call_operand.vmem [shape: f32[32,96], index: 1, kind: input, shape index: {}]   ;;  %s2296_s0 = inlined_call_operand.vmem [shape: f32[16,32], index: 0, kind: input, shape index: {}]   ;;  %s2297_s2 = inlined_call_operand.vmem [shape: f32[1,96], index: 2, kind: input, shape index: {}]   ;;  %s2298_s3 = inlined_call_operand.vmem [shape: f32[32,256], index: 3, kind: input, shape index: {}]   ;;  %s2299_s4 = inlined_call_operand.vmem [shape: f32[1,256], index: 4, kind: input, shape index: {}]   ;;  %s2300_s5 = inlined_call_operand.vmem [shape: f32[16,256], index: 5, kind: output, shape index: {}]  }
   0x1   :  { %v22_v0 = vld [vmem:[%s2295_s1] sm:$0xff]  ;;  %v23_v1 = vld [vmem:[%s2295_s1 + $0x8] sm:$0xff]  ;;  %v24_v2 = vld [vmem:[%s2295_s1 + $0x10] sm:$0xff]  ;;  %1898 = vmatprep.subr.mxu1 %v2043_v8  ;;  %1900 = vmatprep.mubr.msk.f32.mxu1 %vm2044_vm1, %v2043_v8  ;;  %s2049_s8 = smov 56   ;;  %s2050_s9 = smov 80  }
   0x2   :  { %v1978_v3 = vpack.c.bf16 %v23_v1, %v22_v0  ;;  %v25_v4 = vld [vmem:[%s2295_s1 + $0x18] sm:$0xff]  ;;  %v20_v5 = vld [vmem:[%s2296_s0] sm:$0xff]  ;;  %v21_v7 = vld [vmem:[%s2296_s0 + $0x8] sm:$0xff]  ;;  %s2045_s0 = smov 96   ;;  %s2051_s10 = smov 112  }
   0x3   :  { %v1982_v6 = vpack.c.bf16 %v25_v4, %v24_v2  ;;  %1895 = vmatprep.mubr.msk.f32.mxu0 %vm33_vm0, %v20_v5  ;;  %v1814_v9 = vld [vmem:[%s2297_s2] ss:$0 sm:$0xff]  ;;  %s2046_s2 = smov 64   ;;  %s2052_s11 = smov 48  }
   0x4   :  { %1979 = vmatprep.subr.bf16.mxu0 %v1978_v3  ;;  %s2053_s12 = smov 104   ;;  %s2054_s13 = smov 72  }
   0x5   :  { %1981 = vmatpush3.bf16.msra.mxu0 %v1978_v3  ;;  %s2055_s14 = smov 40  }
   0x6   :  { %1983 = vmatprep.subr.bf16.mxu0 %v1982_v6 }
   0x9   :  { %1985 = vmatpush3.bf16.msra.mxu0 %v1982_v6 }
   0xa   :  { %1918 = vmatprep.subr.mxu0 %v2043_v8 }
   0xc   :  { %1896 = vmatmul.mubr.msk.f32.vlgmr.msra.gmra.mrb[0].mxu0 %vm33_vm0, %v21_v7 }
   0xd   :  { %1920 = vmatprep.mubr.msk.f32.mxu0 %vm2044_vm1, %v2043_v8 }
  0xdf   :  { %v1897_v10 = vpop.f32.mrb[0].mxu0 }
  0xe0   :  { %v106_v11 = vpop.f32.mrb[1].mxu0  ;;  %v2116_v13 = vadd.f32 %v1897_v10, %v1814_v9 }
  0xe1   :  { %v2113_v12 = vadd.f32 %v1814_v9, %v106_v11 }
  0xe3   :  { %116 = vrot.lane.b32.xlu0 %v2113_v12, %s2045_s0 }
  0xe7   :  { %194 = vrot.lane.b32.xlu0 %v2116_v13, %s2045_s0 }
 0x155   :  { %v117_v14 = vpop.permute.xlu0 %116 }
 0x156   :  { %1899 = vmatpush3.xpose.msk.msra.mxu1 %vm118_vm2, %v117_v14 }
 0x157   :  { %1903 = vmatprep.subr.mxu1 %v2043_v8 }
 0x159   :  { %1901 = vmatmul.mubr.msk.f32.vlgmr.msra.gmra.mrb[0].mxu1 %vm118_vm2, %v2113_v12  ;;  %v195_v15 = vpop.permute.xlu0 %194 }
 0x15a   :  { %1904 = vmatpush3.xpose.msk.msra.mxu1 %vm118_vm2, %v195_v15  ;;  %1905 = vmatprep.mubr.msk.f32.mxu1 %vm2044_vm1, %v2043_v8 }
 0x15b   :  { %1908 = vmatprep.subr.mxu1 %v2043_v8 }
 0x15d   :  { %1906 = vmatmul.mubr.msk.f32.vlgmr.msra.gmra.mrb[2].mxu1 %vm118_vm2, %v2116_v13 }
 0x15e   :  { %1910 = vmatprep.mubr.msk.f32.mxu1 %vm2044_vm1, %v2043_v8 }
 0x22c   :  { %v189_v16 = vpop.f32.mrb[0].mxu1 }
 0x22d   :  { %v270_v17 = vmul.f32 0.35355338, %v189_v16  ;;  %v1902_v18 = vpop.f32.mrb[1].mxu1 }
 0x22f   :  { %v272_v19 = vsel %vm118_vm2, %v270_v17, -inf }
 0x230   :  { %273 = vmax.xlane.f32.xlu1 %v272_v19  ;;  %v266_v20 = vpop.f32.mrb[2].mxu1 }
 0x231   :  { %v271_v21 = vmul.f32 0.35355338, %v266_v20  ;;  %v1907_v22 = vpop.f32.mrb[3].mxu1 }
 0x233   :  { %v275_v23 = vsel %vm118_vm2, %v271_v21, -inf }
 0x234   :  { %276 = vmax.xlane.f32.xlu1 %v275_v23 }
 0x245   :  { %294 = vrot.lane.b32.xlu1 %v2113_v12, %s2046_s2 }
 0x249   :  { %370 = vrot.lane.b32.xlu1 %v2116_v13, %s2046_s2 }
 0x24d   :  { %528 = vrot.lane.b32.xlu1 %v2116_v13, %s2047_s6 }
 0x2bd   :  { %v274_v24 = vpop.xlane.xlu1 %273 }
 0x2be   :  { %v278_v25 = vsub.f32 %v270_v17, %v274_v24 }
 0x2c0   :  { %v280_v26 = vmul.f32 1.442695, %v278_v25 }
 0x2c1   :  { %v277_v27 = vpop.xlane.xlu1 %276 }
 0x2c2   :  { %2011 = vpow2.f32 %v280_v26  ;;  %v279_v28 = vsub.f32 %v271_v21, %v277_v27 }
 0x2c4   :  { %v282_v29 = vmul.f32 1.442695, %v279_v28 }
 0x2c5   :  { %v295_v30 = vpop.permute.xlu1 %294 }
 0x2c6   :  { %2013 = vpow2.f32 %v282_v29  ;;  %1909 = vmatpush3.msra.mxu1 %v295_v30 }
 0x2c7   :  { %1913 = vmatprep.subr.mxu1 %v2043_v8 }
 0x2c9   :  { %v371_v35 = vpop.permute.xlu1 %370 }
 0x2cc   :  { %v2012_v31 = vpop.eup %2011 }
 0x2cd   :  { %v284_v32 = vsel %vm118_vm2, %v2012_v31, 0.0  ;;  %v529_v36 = vpop.permute.xlu1 %528 }
 0x2ce   :  { %285 = vadd.xlane.f32.xlu0 %v284_v32 }
 0x2d0   :  { %v2014_v33 = vpop.eup %2013 }
 0x2d1   :  { %v287_v34 = vsel %vm118_vm2, %v2014_v33, 0.0 }
 0x2d2   :  { %288 = vadd.xlane.f32.xlu1 %v287_v34 }
 0x2e3   :  { %526 = vrot.lane.b32.xlu1 %v2116_v13, %s2048_s7 }
 0x35b   :  { %v286_v37 = vpop.xlane.xlu0 %285 }
 0x35c   :  { %2015 = vrcp.f32 %v286_v37 }
 0x35f   :  { %v289_v38 = vpop.xlane.xlu1 %288 }
 0x360   :  { %2017 = vrcp.f32 %v289_v38 }
 0x363   :  { %v527_v43 = vpop.permute.xlu1 %526 }
 0x366   :  { %v2016_v39 = vpop.eup %2015 }
 0x367   :  { %v292_v40 = vmul.f32 %v2016_v39, %v2012_v31 }
 0x369   :  { %1911 = vmatmul.mubr.msk.f32.vlgmr.msra.gmra.mrb[4].mxu1 %vm118_vm2, %v292_v40 }
 0x36a   :  { %v2018_v41 = vpop.eup %2017  ;;  %1914 = vmatpush3.msra.mxu1 %v371_v35  ;;  %1915 = vmatprep.mubr.msk.f32.mxu1 %vm2044_vm1, %v2043_v8 }
 0x36b   :  { %v293_v42 = vmul.f32 %v2018_v41, %v2014_v33  ;;  %1923 = vmatprep.subr.mxu1 %v2043_v8 }
 0x36d   :  { %1916 = vmatmul.mubr.msk.f32.vlgmr.msra.gmra.mrb[6].mxu1 %vm118_vm2, %v293_v42 }
 0x36e   :  { %1925 = vmatprep.mubr.msk.f32.mxu1 %vm2044_vm1, %v2043_v8 }
 0x371   :  { %1924 = vmatpush3.xpose.msk.msra.mxu1 %vm118_vm2, %v529_v36 }
 0x372   :  { %1933 = vmatprep.subr.mxu1 %v2043_v8 }
 0x374   :  { %1926 = vmatmul.mubr.msk.f32.vlgmr.msra.gmra.mrb[8].mxu1 %vm118_vm2, %v527_v43 }
 0x375   :  { %1935 = vmatprep.mubr.msk.f32.mxu1 %vm2044_vm1, %v2043_v8 }
 0x43c   :  { %v2154_v44 = vpop.f32.mrb[4].mxu1 }
 0x43d   :  { %v1912_v45 = vpop.f32.mrb[5].mxu1 }
 0x440   :  { %v2156_v46 = vpop.f32.mrb[6].mxu1 }
 0x441   :  { %v1917_v47 = vpop.f32.mrb[7].mxu1 }
 0x447   :  { %v600_v48 = vpop.f32.mrb[8].mxu1 }
 0x448   :  { %v605_v49 = vmul.f32 0.35355338, %v600_v48  ;;  %v1927_v50 = vpop.f32.mrb[9].mxu1 }
 0x44a   :  { %v609_v51 = vsel %vm118_vm2, %v605_v49, -inf }
 0x44b   :  { %610 = vmax.xlane.f32.xlu0 %v609_v51 }
 0x461   :  { %704 = vrot.lane.b32.xlu0 %v2116_v13, %s2049_s8 }
 0x465   :  { %950 = vrot.lane.b32.xlu0 %v2113_v12, %s2050_s9 }
 0x469   :  { %948 = vrot.lane.b32.xlu0 %v2113_v12, %s2051_s10 }
 0x46d   :  { %1028 = vrot.lane.b32.xlu0 %v2116_v13, %s2050_s9 }
 0x471   :  { %1026 = vrot.lane.b32.xlu0 %v2116_v13, %s2051_s10 }
 0x475   :  { %448 = vrot.lane.b32.xlu0 %v2113_v12, %s2048_s7 }
 0x4d8   :  { %v611_v52 = vpop.xlane.xlu0 %610 }
 0x4d9   :  { %v613_v53 = vsub.f32 %v605_v49, %v611_v52 }
 0x4db   :  { %v616_v54 = vmul.f32 1.442695, %v613_v53 }
 0x4dc   :  { %v705_v55 = vpop.permute.xlu0 %704 }
 0x4dd   :  { %2019 = vpow2.f32 %v616_v54  ;;  %1934 = vmatpush3.msra.mxu1 %v705_v55 }
 0x4de   :  { %1938 = vmatprep.subr.mxu1 %v2043_v8 }
 0x4e0   :  { %v951_v58 = vpop.permute.xlu0 %950 }
 0x4e4   :  { %v949_v59 = vpop.permute.xlu0 %948 }
 0x4e7   :  { %v2020_v56 = vpop.eup %2019 }
 0x4e8   :  { %v621_v57 = vsel %vm118_vm2, %v2020_v56, 0.0  ;;  %v1029_v60 = vpop.permute.xlu0 %1028 }
 0x4e9   :  { %622 = vadd.xlane.f32.xlu1 %v621_v57 }
 0x4ec   :  { %v1027_v62 = vpop.permute.xlu0 %1026 }
 0x4f0   :  { %v449_v0 = vpop.permute.xlu0 %448 }
 0x4fa   :  { %450 = vrot.lane.b32.xlu1 %v2113_v12, %s2047_s6 }
 0x576   :  { %v623_v61 = vpop.xlane.xlu1 %622 }
 0x577   :  { %2021 = vrcp.f32 %v623_v61 }
 0x57a   :  { %v451_v63 = vpop.permute.xlu1 %450 }
 0x57b   :  { %1919 = vmatpush3.xpose.msk.msra.mxu0 %vm118_vm2, %v451_v63 }
 0x57c   :  { %1928 = vmatprep.subr.mxu0 %v2043_v8 }
 0x57e   :  { %1921 = vmatmul.mubr.msk.f32.vlgmr.msra.gmra.mrb[2].mxu0 %vm118_vm2, %v449_v0  ;;  %v781_v0 = vld [vmem:[%s2298_s3 + $0x18] sm:$0xff] }
 0x57f   :  { %1930 = vmatprep.mubr.msk.f32.mxu0 %vm2044_vm1, %v2043_v8 }
 0x581   :  { %v2022_v1 = vpop.eup %2021 }
 0x582   :  { %v627_v2 = vmul.f32 %v2022_v1, %v2020_v56  ;;  %v780_v1 = vld [vmem:[%s2298_s3 + $0x10] sm:$0xff] }
 0x584   :  { %1936 = vmatmul.mubr.msk.f32.vlgmr.msra.gmra.mrb[10].mxu1 %vm118_vm2, %v627_v2  ;;  %v447_v2 = vld [vmem:[%s2298_s3 + $0x8] sm:$0xff] }
 0x585   :  { %1939 = vmatpush3.xpose.msk.msra.mxu1 %vm118_vm2, %v951_v58  ;;  %1940 = vmatprep.mubr.msk.f32.mxu1 %vm2044_vm1, %v2043_v8 }
 0x586   :  { %1943 = vmatprep.subr.mxu1 %v2043_v8 }
 0x588   :  { %1941 = vmatmul.mubr.msk.f32.vlgmr.msra.gmra.mrb[12].mxu1 %vm118_vm2, %v949_v59 }
 0x589   :  { %1944 = vmatpush3.xpose.msk.msra.mxu1 %vm118_vm2, %v1029_v60  ;;  %1945 = vmatprep.mubr.msk.f32.mxu1 %vm2044_vm1, %v2043_v8 }
 0x58a   :  { %1948 = vmatprep.subr.mxu1 %v2043_v8 }
 0x58c   :  { %1946 = vmatmul.mubr.msk.f32.vlgmr.msra.gmra.mrb[14].mxu1 %vm118_vm2, %v1027_v62 }
 0x58d   :  { %1950 = vmatprep.mubr.msk.f32.mxu1 %vm2044_vm1, %v2043_v8 }
 0x651   :  { %v522_v3 = vpop.f32.mrb[2].mxu0 }
 0x652   :  { %v1922_v4 = vpop.f32.mrb[3].mxu0  ;;  %v604_v29 = vmul.f32 0.35355338, %v522_v3 }
 0x654   :  { %v606_v30 = vsel %vm118_vm2, %v604_v29, -inf }
 0x657   :  { %v2189_v5 = vpop.f32.mrb[10].mxu1 }
 0x658   :  { %v1937_v6 = vpop.f32.mrb[11].mxu1 }
 0x65b   :  { %v1022_v7 = vpop.f32.mrb[12].mxu1 }
 0x65c   :  { %v1104_v9 = vmul.f32 0.35355338, %v1022_v7  ;;  %v1942_v10 = vpop.f32.mrb[13].mxu1 }
 0x65e   :  { %v1106_v11 = vsel %vm118_vm2, %v1104_v9, -inf }
 0x65f   :  { %1107 = vmax.xlane.f32.xlu0 %v1106_v11  ;;  %v1100_v14 = vpop.f32.mrb[14].mxu1 }
 0x660   :  { %v1105_v15 = vmul.f32 0.35355338, %v1100_v14  ;;  %v1947_v16 = vpop.f32.mrb[15].mxu1 }
 0x662   :  { %v1109_v17 = vsel %vm118_vm2, %v1105_v15, -inf }
 0x663   :  { %1110 = vmax.xlane.f32.xlu1 %v1109_v17  ;;  %v446_v17 = vld [vmem:[%s2298_s3] sm:$0xff] }
 0x674   :  { %1204 = vrot.lane.b32.xlu1 %v2116_v13, %s2052_s11 }
 0x675   :  { %1128 = vrot.lane.b32.xlu0 %v2113_v12, %s2052_s11 }
 0x678   :  { %1369 = vrot.lane.b32.xlu1 %v2113_v12, %s2053_s12 }
 0x67c   :  { %1447 = vrot.lane.b32.xlu1 %v2116_v13, %s2053_s12 }
 0x6ec   :  { %v1108_v18 = vpop.xlane.xlu0 %1107 }
 0x6ed   :  { %v1112_v19 = vsub.f32 %v1104_v9, %v1108_v18 }
 0x6ef   :  { %v1114_v20 = vmul.f32 1.442695, %v1112_v19  ;;  %v1281_v19 = vld [vmem:[%s2298_s3 + $0x28] sm:$0xff] }
 0x6f0   :  { %v1129_v21 = vpop.permute.xlu0 %1128  ;;  %v1111_v22 = vpop.xlane.xlu1 %1110 }
 0x6f1   :  { %2023 = vpow2.f32 %v1114_v20  ;;  %v1113_v23 = vsub.f32 %v1105_v15, %v1111_v22  ;;  %1949 = vmatpush3.msra.mxu1 %v1129_v21 }
 0x6f2   :  { %1953 = vmatprep.subr.mxu1 %v2043_v8 }
 0x6f3   :  { %v1116_v24 = vmul.f32 1.442695, %v1113_v23 }
 0x6f4   :  { %v1205_v35 = vpop.permute.xlu1 %1204 }
 0x6f5   :  { %2025 = vpow2.f32 %v1116_v24 }
 0x6f8   :  { %v1370_v38 = vpop.permute.xlu1 %1369 }
 0x6fb   :  { %v2024_v25 = vpop.eup %2023 }
 0x6fc   :  { %v1118_v26 = vsel %vm118_vm2, %v2024_v25, 0.0  ;;  %v1448_v40 = vpop.permute.xlu1 %1447 }
 0x6fd   :  { %1119 = vadd.xlane.f32.xlu0 %v1118_v26 }
 0x6ff   :  { %v2026_v27 = vpop.eup %2025 }
 0x700   :  { %v1121_v28 = vsel %vm118_vm2, %v2026_v27, 0.0 }
 0x701   :  { %1122 = vadd.xlane.f32.xlu0 %v1121_v28 }
 0x717   :  { %1371 = vrot.lane.b32.xlu0 %v2113_v12, %s2054_s13 }
 0x71b   :  { %1449 = vrot.lane.b32.xlu0 %v2116_v13, %s2054_s13 }
 0x73a   :  { %607 = vmax.xlane.f32.xlu0 %v606_v30 }
 0x750   :  { %628 = vrot.lane.b32.xlu0 %v2113_v12, %s2049_s8 }
 0x754   :  { %1549 = vrot.lane.b32.xlu0 %v2113_v12, %s2055_s14 }
 0x78a   :  { %v1120_v31 = vpop.xlane.xlu0 %1119 }
 0x78b   :  { %2027 = vrcp.f32 %v1120_v31 }
 0x78e   :  { %v1123_v32 = vpop.xlane.xlu0 %1122 }
 0x78f   :  { %2029 = vrcp.f32 %v1123_v32  ;;  %v1792_v32 = vlaneseq }
 0x792   :  { %v1372_v12 = vpop.permute.xlu0 %1371 }
 0x795   :  { %v2028_v33 = vpop.eup %2027 }
 0x796   :  { %v1126_v34 = vmul.f32 %v2028_v33, %v2024_v25  ;;  %v1450_v39 = vpop.permute.xlu0 %1449  ;;  %v1701_v25 = vld [vmem:[%s2298_s3 + $0x30] sm:$0xff]  ;;  %v1793_v33 = vshrl.u32 %v1792_v32, 7 }
 0x798   :  { %1951 = vmatmul.mubr.msk.f32.vlgmr.msra.gmra.mrb[16].mxu1 %vm118_vm2, %v1126_v34  ;;  %v1794_v34 = vsub.s32 0, %v1793_v33 }
 0x799   :  { %v2030_v36 = vpop.eup %2029  ;;  %1954 = vmatpush3.msra.mxu1 %v1205_v35  ;;  %1955 = vmatprep.mubr.msk.f32.mxu1 %vm2044_vm1, %v2043_v8  ;;  %v1790_v35 = vld [vmem:[%s2299_s4] sm:$0x3] }
 0x79a   :  { %v1127_v37 = vmul.f32 %v2030_v36, %v2026_v27  ;;  %1958 = vmatprep.subr.mxu1 %v2043_v8  ;;  %v1798_v36 = vsub.s32 1, %v1793_v33 }
 0x79c   :  { %1956 = vmatmul.mubr.msk.f32.vlgmr.msra.gmra.mrb[18].mxu1 %vm118_vm2, %v1127_v37  ;;  %v1795_v37 = vrot.slane %v1790_v35, %v1794_v34 }
 0x79d   :  { %1960 = vmatprep.mubr.msk.f32.mxu1 %vm2044_vm1, %v2043_v8 }
 0x7a0   :  { %1959 = vmatpush3.xpose.msk.msra.mxu1 %vm118_vm2, %v1372_v12  ;;  %v1799_v12 = vrot.slane %v1790_v35, %v1798_v36 }
 0x7a1   :  { %1963 = vmatprep.subr.mxu1 %v2043_v8 }
 0x7a3   :  { %1961 = vmatmul.mubr.msk.f32.vlgmr.msra.gmra.mrb[20].mxu1 %vm118_vm2, %v1370_v38 }
 0x7a4   :  { %1964 = vmatpush3.xpose.msk.msra.mxu1 %vm118_vm2, %v1450_v39  ;;  %1965 = vmatprep.mubr.msk.f32.mxu1 %vm2044_vm1, %v2043_v8 }
 0x7a5   :  { %1973 = vmatprep.subr.mxu1 %v2043_v8 }
 0x7a7   :  { %1966 = vmatmul.mubr.msk.f32.vlgmr.msra.gmra.mrb[22].mxu1 %vm118_vm2, %v1448_v40 }
 0x7a8   :  { %1975 = vmatprep.mubr.msk.f32.mxu1 %vm2044_vm1, %v2043_v8 }
 0x7c7   :  { %v608_v41 = vpop.xlane.xlu0 %607 }
 0x7c8   :  { %v612_v42 = vsub.f32 %v604_v29, %v608_v41 }
 0x7ca   :  { %v614_v43 = vmul.f32 1.442695, %v612_v42 }
 0x7cb   :  { %v629_v45 = vpop.permute.xlu0 %628 }
 0x7cc   :  { %2031 = vpow2.f32 %v614_v43  ;;  %1929 = vmatpush3.msra.mxu0 %v629_v45 }
 0x7cd   :  { %788 = vmatprep.subr.mxu0 %v781_v0 }
 0x7cf   :  { %v1550_v21 = vpop.permute.xlu0 %1549 }
 0x7d6   :  { %v2032_v47 = vpop.eup %2031 }
 0x7d7   :  { %v618_v48 = vsel %vm118_vm2, %v2032_v47, 0.0 }
 0x7d8   :  { %619 = vadd.xlane.f32.xlu1 %v618_v48 }
 0x865   :  { %v620_v49 = vpop.xlane.xlu1 %619 }
 0x866   :  { %2033 = vrcp.f32 %v620_v49 }
 0x86b   :  { %v1200_v50 = vpop.f32.mrb[16].mxu1 }
 0x86c   :  { %v1952_v51 = vpop.f32.mrb[17].mxu1 }
 0x86f   :  { %v1276_v52 = vpop.f32.mrb[18].mxu1 }
 0x870   :  { %v2034_v53 = vpop.eup %2033  ;;  %v1957_v54 = vpop.f32.mrb[19].mxu1 }
 0x871   :  { %v626_v55 = vmul.f32 %v2034_v53, %v2032_v47 }
 0x873   :  { %1931 = vmatmul.mubr.msk.f32.vlgmr.msra.gmra.mrb[4].mxu0 %vm118_vm2, %v626_v55 }
 0x874   :  { %852 = vmatprep.mubr.f32.mxu0 %v2043_v8  ;;  %789 = vmatpush1.msra.mxu0 %v780_v1 }
 0x875   :  { %871 = vmatprep.subr.mxu0 %v447_v2 }
 0x876   :  { %v1443_v56 = vpop.f32.mrb[20].mxu1 }
 0x877   :  { %v1525_v57 = vmul.f32 0.35355338, %v1443_v56  ;;  %v1962_v58 = vpop.f32.mrb[21].mxu1 }
 0x879   :  { %v1527_v59 = vsel %vm118_vm2, %v1525_v57, -inf }
 0x87a   :  { %1528 = vmax.xlane.f32.xlu1 %v1527_v59  ;;  %v1521_v60 = vpop.f32.mrb[22].mxu1 }
 0x87b   :  { %v1526_v61 = vmul.f32 0.35355338, %v1521_v60  ;;  %v1967_v62 = vpop.f32.mrb[23].mxu1 }
 0x87d   :  { %v1530_v63 = vsel %vm118_vm2, %v1526_v61, -inf }
 0x87e   :  { %1531 = vmax.xlane.f32.xlu1 %v1530_v63 }
 0x907   :  { %v1529_v3 = vpop.xlane.xlu1 %1528 }
 0x908   :  { %v1533_v4 = vsub.f32 %v1525_v57, %v1529_v3 }
 0x90a   :  { %v1535_v6 = vmul.f32 1.442695, %v1533_v4 }
 0x90b   :  { %v1532_v7 = vpop.xlane.xlu1 %1531 }
 0x90c   :  { %2035 = vpow2.f32 %v1535_v6  ;;  %v1534_v9 = vsub.f32 %v1526_v61, %v1532_v7 }
 0x90e   :  { %v1537_v10 = vmul.f32 1.442695, %v1534_v9 }
 0x910   :  { %2037 = vpow2.f32 %v1537_v10 }
 0x916   :  { %v2036_v11 = vpop.eup %2035 }
 0x917   :  { %v1539_v14 = vsel %vm118_vm2, %v2036_v11, 0.0 }
 0x918   :  { %1540 = vadd.xlane.f32.xlu1 %v1539_v14 }
 0x91a   :  { %v2038_v15 = vpop.eup %2037 }
 0x91b   :  { %v1542_v16 = vsel %vm118_vm2, %v2038_v15, 0.0 }
 0x91c   :  { %1543 = vadd.xlane.f32.xlu1 %v1542_v16 }
 0x92d   :  { %1625 = vrot.lane.b32.xlu1 %v2116_v13, %s2055_s14  ;;  %v1280_v13 = vld [vmem:[%s2298_s3 + $0x20] sm:$0xff] }
 0x946   :  { %v700_v18 = vpop.f32.mrb[4].mxu0 }
 0x947   :  { %v1932_v20 = vpop.f32.mrb[5].mxu0  ;;  %1829 = vmatmul.mubr.msk.f32.vlgmr.msra.gmra.mrb[6].mxu0 %vm118_vm2, %v700_v18 }
 0x948   :  { %858 = vmatprep.mubr.f32.mxu0 %v2043_v8  ;;  %872 = vmatpush1.msra.mxu0 %v446_v17 }
 0x949   :  { %1288 = vmatprep.subr.mxu0 %v1281_v19 }
 0x94b   :  { %1830 = vmatmul.mubr.msk.f32.gmra.mrb[8].mxu0 %vm118_vm2, %v2189_v5  ;;  %v1702_v5 = vld [vmem:[%s2298_s3 + $0x38] sm:$0xff] }
 0x94c   :  { %935 = vmatprep.mubr.f32.mxu0 %v2043_v8 }
 0x94f   :  { %1831 = vmatmul.mubr.msk.f32.vlgmr.msra.gmra.mrb[6].mxu0 %vm118_vm2, %v2154_v44 }
 0x950   :  { %941 = vmatprep.mubr.f32.mxu0 %v2043_v8  ;;  %1289 = vmatpush1.msra.mxu0 %v1280_v13 }
 0x951   :  { %1968 = vmatprep.subr.mxu0 %v2043_v8 }
 0x953   :  { %1832 = vmatmul.mubr.msk.f32.gmra.mrb[8].mxu0 %vm118_vm2, %v2156_v46 }
 0x954   :  { %1352 = vmatprep.mubr.f32.mxu0 %v2043_v8 }
 0x957   :  { %1839 = vmatmul.mubr.msk.f32.vlgmr.msra.gmra.mrb[6].mxu0 %vm118_vm2, %v1200_v50 }
 0x958   :  { %1969 = vmatpush3.msra.mxu0 %v1550_v21  ;;  %1358 = vmatprep.mubr.f32.mxu0 %v2043_v8 }
 0x959   :  { %1709 = vmatprep.subr.mxu0 %v1702_v5 }
 0x95b   :  { %1840 = vmatmul.mubr.msk.f32.gmra.mrb[8].mxu0 %vm118_vm2, %v1276_v52 }
 0x95c   :  { %1970 = vmatprep.mubr.msk.f32.mxu0 %vm2044_vm1, %v2043_v8 }
 0x9a5   :  { %v1541_v44 = vpop.xlane.xlu1 %1540 }
 0x9a6   :  { %2039 = vrcp.f32 %v1541_v44 }
 0x9a9   :  { %v1544_v46 = vpop.xlane.xlu1 %1543 }
 0x9aa   :  { %2041 = vrcp.f32 %v1544_v46 }
 0x9ad   :  { %v1626_v22 = vpop.permute.xlu1 %1625 }
 0x9ae   :  { %1974 = vmatpush3.msra.mxu1 %v1626_v22 }
 0x9b0   :  { %v2040_v23 = vpop.eup %2039 }
 0x9b1   :  { %v1547_v24 = vmul.f32 %v2040_v23, %v2036_v11 }
 0x9b3   :  { %1971 = vmatmul.mubr.msk.f32.vlgmr.msra.gmra.mrb[10].mxu0 %vm118_vm2, %v1547_v24 }
 0x9b4   :  { %v2042_v26 = vpop.eup %2041  ;;  %1710 = vmatpush1.msra.mxu0 %v1701_v25  ;;  %1773 = vmatprep.mubr.f32.mxu0 %v2043_v8 }
 0x9b5   :  { %v1548_v27 = vmul.f32 %v2042_v26, %v2038_v15 }
 0x9b7   :  { %1976 = vmatmul.mubr.msk.f32.vlgmr.msra.gmra.mrb[24].mxu1 %vm118_vm2, %v1548_v27 }
 0xa86   :  { %v1621_v28 = vpop.f32.mrb[10].mxu0 }
 0xa87   :  { %v1972_v29 = vpop.f32.mrb[11].mxu0  ;;  %1847 = vmatmul.mubr.msk.f32.vlgmr.msra.gmra.mrb[6].mxu0 %vm118_vm2, %v1621_v28 }
 0xa88   :  { %1779 = vmatprep.mubr.f32.mxu0 %v2043_v8 }
 0xa8a   :  { %v1697_v30 = vpop.f32.mrb[24].mxu1 }
 0xa8b   :  { %v1977_v31 = vpop.f32.mrb[25].mxu1  ;;  %1848 = vmatmul.mubr.msk.f32.gmra.mrb[8].mxu0 %vm118_vm2, %v1697_v30 }
 0xb5a   :  { %v1775_v38 = vpop.f32.mrb[6].mxu0 }
 0xb5b   :  { %v1802_v39 = vadd.f32 %v1795_v37, %v1775_v38  ;;  %v1777_v40 = vpop.f32.mrb[7].mxu0 }
 0xb5c   :  { %v1803_v41 = vadd.f32 %v1799_v12, %v1777_v40 }
 0xb5d   :  { %1806 = vst [vmem:[%s2300_s5] sm:$0xff] %v1802_v39 }
 0xb5e   :  { %1807 = vst [vmem:[%s2300_s5 + $0x8] sm:$0xff] %v1803_v41  ;;  %v1781_v8 = vpop.f32.mrb[8].mxu0 }
 0xb5f   :  { %v1804_v42 = vadd.f32 %v1795_v37, %v1781_v8  ;;  %v1783_v43 = vpop.f32.mrb[9].mxu0 }
 0xb60   :  { %v1805_v45 = vadd.f32 %v1799_v12, %v1783_v43 }
 0xb61   :  { %1808 = vst [vmem:[%s2300_s5 + $0x10] sm:$0xff] %v1804_v42 }
 0xb62   :  { %1809 = vst [vmem:[%s2300_s5 + $0x18] sm:$0xff] %v1805_v45 }

</bundles_post_ra>
